<compile_context>
chip_gen: v6e
topology: v6e:2x2x1
jax: 0.10.0
libtpu: 0.0.40
codegen_flags: <defaults>
</compile_context>

<pallas_src>
import jax
import jax.numpy as jnp
from jax.experimental import pallas as pl
from jax.experimental.pallas import tpu as pltpu


# ------------------------------- kernel --------------------------------------

def make_se_kernel(inv_hw, use_mxu):
    """Builds the SE kernel for a fixed (trace-time) inv_hw and MLP path."""

    def se_kernel(x_ref, w1t_ref, b1_ref, w2t_ref, b2_ref, o_ref):
        # x_ref / o_ref : (Bt, C, HWp)  -- spatial flattened onto the lane axis
        # w1t_ref       : (C, Cr)       -- fc1 weight, transposed vs. PyTorch
        # b1_ref        : (1, Cr)
        # w2t_ref       : (Cr, C)       -- fc2 weight, transposed vs. PyTorch
        # b2_ref        : (1, C)
        x = x_ref[...].astype(jnp.float32)                  # (Bt, C, HWp)

        # Global average pool over the lane-dense spatial axis.  Padded
        # columns are zero, so dividing by the true H*W is exact.
        avg = jnp.sum(x, axis=2) * inv_hw                   # (Bt, C)

        w1t = w1t_ref[...]
        w2t = w2t_ref[...]
        if use_mxu:
            # Production-size channels: MXU matmuls (MXU is otherwise idle).
            s = jnp.dot(avg, w1t, preferred_element_type=jnp.float32) + b1_ref[...]
            s = jnp.maximum(s, 0.0)
            t = jnp.dot(s, w2t, preferred_element_type=jnp.float32) + b2_ref[...]
        else:
            # Tiny mat-vecs: VPU broadcast-multiply + sublane reduce; keeps the
            # serial avg->fc->fc->scale chain off the MXU pad/drain path.
            s = jnp.sum(avg[:, :, None] * w1t[None, :, :], axis=1) + b1_ref[...]
            s = jnp.maximum(s, 0.0)                          # (Bt, Cr)
            t = jnp.sum(s[:, :, None] * w2t[None, :, :], axis=1) + b2_ref[...]

        # h_sigmoid:  relu6(t + 3) / 6
        scale = jnp.clip(t + 3.0, 0.0, 6.0) * (1.0 / 6.0)    # (Bt, C)

        # Channel-wise scale, broadcast over the lane-dense spatial axis.
        o_ref[...] = (x * scale[:, :, None]).astype(o_ref.dtype)

    return se_kernel


# ------------------------------- wrapper --------------------------------------

def se_layer(x_nchw, params):
    """x_nchw: (B, C, H, W).  params: (w1t, b1, w2t, b2) in kernel layouts."""
    w1t, b1, w2t, b2 = params
    B, C, H, W = x_nchw.shape
    HW = H * W
    # Lane-dense spatial axis: pad H*W up to a multiple of 128 so stores are
    # unmasked full-width vst (e.g. 49 -> 128, 196 -> 256; 256 stays 256).
    HWp = ((HW + 127) // 128) * 128

    x_flat = x_nchw.reshape(B, C, HW)                        # contiguous reshape
    if HWp != HW:
        x_flat = jnp.pad(x_flat, ((0, 0), (0, 0), (0, HWp - HW)))

    # ---- block / grid selection -------------------------------------------
    itemsize = jnp.dtype(x_flat.dtype).itemsize
    per_image_bytes = C * HWp * itemsize
    target_block_bytes = 2 << 20                             # ~2 MiB per block
    Bt = max(1, min(B, target_block_bytes // per_image_bytes))
    if B >= 2:                                               # >= 2 grid steps for v7x megacore
        Bt = min(Bt, max(1, B // 2))
    while B % Bt:                                            # full blocks only
        Bt -= 1
    grid = (B // Bt,)

    Cr = w1t.shape[1]
    use_mxu = (C >= 128 and Cr >= 8)
    kernel = make_se_kernel(1.0 / HW, use_mxu)

    block_bytes = Bt * per_image_bytes
    # x + out, double-buffered, plus weights/headroom; stays well under v7x's
    # 64 MiB physical VMEM and under v5e/v6e's 128 MiB.
    vmem_limit = int(min(48 << 20, max(16 << 20, 6 * block_bytes)))

    full = lambda a: pl.BlockSpec(a.shape, lambda b: (0,) * a.ndim)

    grid_spec = pltpu.PrefetchScalarGridSpec(
        num_scalar_prefetch=0,
        grid=grid,
        in_specs=[
            pl.BlockSpec((Bt, C, HWp), lambda b: (b, 0, 0)),
            full(w1t), full(b1), full(w2t), full(b2),
        ],
        out_specs=pl.BlockSpec((Bt, C, HWp), lambda b: (b, 0, 0)),
    )

    out = pl.pallas_call(
        kernel,
        out_shape=jax.ShapeDtypeStruct((B, C, HWp), x_flat.dtype),
        grid_spec=grid_spec,
        compiler_params=pltpu.CompilerParams(
            dimension_semantics=("parallel",),
            vmem_limit_bytes=vmem_limit),
    )(x_flat, w1t, b1, w2t, b2)

    if HWp != HW:
        out = out[:, :, :HW]
    return out.reshape(B, C, H, W)


# ------------------------- parameter construction ---------------------------

def make_params(key, channel, reduction=4):
    cr = max(1, channel // reduction)
    k1, k2, k3, k4 = jax.random.split(key, 4)
    # PyTorch layouts: fc1.weight (cr, channel), fc1.bias (cr,)
    #                  fc2.weight (channel, cr), fc2.bias (channel,)
    w1 = 0.3 * jax.random.normal(k1, (cr, channel), dtype=jnp.float32)
    b1 = 0.3 * jax.random.normal(k2, (cr,), dtype=jnp.float32)
    w2 = 0.3 * jax.random.normal(k3, (channel, cr), dtype=jnp.float32)
    b2 = 0.3 * jax.random.normal(k4, (channel,), dtype=jnp.float32)
    # Kernel-friendly layouts: both weights transposed, biases as 2-D rows.
    return (w1.T, b1[None, :], w2.T, b2[None, :])


# ----------------------------- pure-JAX reference ----------------------------

def reference(x_nchw, params):
    w1t, b1, w2t, b2 = params
    y = x_nchw.mean(axis=(2, 3))                       # (B, C)
    s = jnp.maximum(y @ w1t + b1, 0.0)                 # (B, Cr)
    t = s @ w2t + b2                                   # (B, C)
    scale = jnp.clip(t + 3.0, 0.0, 6.0) / 6.0          # h_sigmoid
    return x_nchw * scale[:, :, None, None]


if __name__ == "__main__":
    B, C, H, W = 2, 4, 16, 16                          # PyTorch NCHW input
    key = jax.random.PRNGKey(0)
    kx, kp = jax.random.split(key)

    x = jax.random.normal(kx, (B, C, H, W), dtype=jnp.float32)
    params = make_params(kp, C, reduction=4)

    out = se_layer(x, params)
    out = jax.block_until_ready(out)

    ref = reference(x, params)
    assert out.shape == (B, C, H, W)
    assert jnp.allclose(out, ref, rtol=1e-5, atol=1e-5), \
        f"max abs err {jnp.max(jnp.abs(out - ref))}"

    print("KERNEL_OK")
</pallas_src>

<mosaic_0001>
module attributes {stable_mosaic.version = 11 : i64} {
  func.func @se_kernel(%arg0: i32, %arg1: memref<1x4x256xf32, #tpu.memory_space<vmem>>, %arg2: memref<4x1xf32, #tpu.memory_space<vmem>>, %arg3: memref<1x1xf32, #tpu.memory_space<vmem>>, %arg4: memref<1x4xf32, #tpu.memory_space<vmem>>, %arg5: memref<1x4xf32, #tpu.memory_space<vmem>>, %arg6: memref<1x4x256xf32, #tpu.memory_space<vmem>>) attributes {dimension_semantics = [#tpu.dimension_semantics<parallel>], iteration_bounds = array<i64: 2>, scalar_prefetch = 0 : i64, scratch_operands = 0 : i64, tpu.core_type = #tpu.core_type<tc>, window_params = [{transform_indices = @transform_0, window_bounds = array<i64: 1, 4, 256>}, {pipeline_mode = #tpu.pipeline_mode<synchronous>, transform_indices = @transform_1, window_bounds = array<i64: 4, 1>}, {pipeline_mode = #tpu.pipeline_mode<synchronous>, transform_indices = @transform_2, window_bounds = array<i64: 1, 1>}, {pipeline_mode = #tpu.pipeline_mode<synchronous>, transform_indices = @transform_3, window_bounds = array<i64: 1, 4>}, {pipeline_mode = #tpu.pipeline_mode<synchronous>, transform_indices = @transform_4, window_bounds = array<i64: 1, 4>}, {transform_indices = @transform_5, window_bounds = array<i64: 1, 4, 256>}]} {
    %c0 = arith.constant 0 : index
    %c0_0 = arith.constant 0 : index
    %c0_1 = arith.constant 0 : index
    %0 = vector.load %arg1[%c0, %c0_0, %c0_1] : memref<1x4x256xf32, #tpu.memory_space<vmem>>, vector<1x4x256xf32>
    %cst = arith.constant dense<0.000000e+00> : vector<1x4xf32>
    %1 = vector.multi_reduction <add>, %0, %cst [2] : vector<1x4x256xf32> to vector<1x4xf32>
    %cst_2 = arith.constant 3.906250e-03 : f32
    %2 = vector.broadcast %cst_2 : f32 to vector<1x4xf32>
    %3 = arith.mulf %1, %2 : vector<1x4xf32>
    %c0_3 = arith.constant 0 : index
    %c0_4 = arith.constant 0 : index
    %4 = vector.load %arg2[%c0_3, %c0_4] : memref<4x1xf32, #tpu.memory_space<vmem>>, vector<4x1xf32>
    %c0_5 = arith.constant 0 : index
    %c0_6 = arith.constant 0 : index
    %5 = vector.load %arg4[%c0_5, %c0_6] : memref<1x4xf32, #tpu.memory_space<vmem>>, vector<1x4xf32>
    %6 = vector.shape_cast %3 : vector<1x4xf32> to vector<1x4x1xf32>
    %7 = vector.shape_cast %4 : vector<4x1xf32> to vector<1x4x1xf32>
    %8 = arith.mulf %6, %7 : vector<1x4x1xf32>
    %cst_7 = arith.constant dense<0.000000e+00> : vector<1x1xf32>
    %9 = vector.multi_reduction <add>, %8, %cst_7 [1] : vector<1x4x1xf32> to vector<1x1xf32>
    %c0_8 = arith.constant 0 : index
    %c0_9 = arith.constant 0 : index
    %10 = vector.load %arg3[%c0_8, %c0_9] : memref<1x1xf32, #tpu.memory_space<vmem>>, vector<1x1xf32>
    %11 = arith.addf %9, %10 : vector<1x1xf32>
    %cst_10 = arith.constant 0.000000e+00 : f32
    %12 = vector.broadcast %cst_10 : f32 to vector<1x1xf32>
    %13 = arith.maximumf %11, %12 : vector<1x1xf32>
    %14 = vector.shape_cast %13 : vector<1x1xf32> to vector<1x1x1xf32>
    %15 = vector.shape_cast %5 : vector<1x4xf32> to vector<1x1x4xf32>
    %16 = vector.broadcast %14 : vector<1x1x1xf32> to vector<1x1x4xf32>
    %17 = arith.mulf %16, %15 : vector<1x1x4xf32>
    %cst_11 = arith.constant dense<0.000000e+00> : vector<1x4xf32>
    %18 = vector.multi_reduction <add>, %17, %cst_11 [1] : vector<1x1x4xf32> to vector<1x4xf32>
    %c0_12 = arith.constant 0 : index
    %c0_13 = arith.constant 0 : index
    %19 = vector.load %arg5[%c0_12, %c0_13] : memref<1x4xf32, #tpu.memory_space<vmem>>, vector<1x4xf32>
    %20 = arith.addf %18, %19 : vector<1x4xf32>
    %cst_14 = arith.constant 3.000000e+00 : f32
    %21 = vector.broadcast %cst_14 : f32 to vector<1x4xf32>
    %22 = arith.addf %20, %21 : vector<1x4xf32>
    %cst_15 = arith.constant 0.000000e+00 : f32
    %cst_16 = arith.constant 6.000000e+00 : f32
    %23 = vector.broadcast %cst_15 : f32 to vector<1x4xf32>
    %24 = arith.maximumf %23, %22 : vector<1x4xf32>
    %25 = vector.broadcast %cst_16 : f32 to vector<1x4xf32>
    %26 = arith.minimumf %25, %24 : vector<1x4xf32>
    %cst_17 = arith.constant 0.166666672 : f32
    %27 = vector.broadcast %cst_17 : f32 to vector<1x4xf32>
    %28 = arith.mulf %26, %27 : vector<1x4xf32>
    %29 = vector.shape_cast %28 : vector<1x4xf32> to vector<1x4x1xf32>
    %30 = vector.broadcast %29 : vector<1x4x1xf32> to vector<1x4x256xf32>
    %31 = arith.mulf %0, %30 : vector<1x4x256xf32>
    %c0_18 = arith.constant 0 : index
    %c0_19 = arith.constant 0 : index
    %c0_20 = arith.constant 0 : index
    %32 = vector.load %arg6[%c0_18, %c0_19, %c0_20] : memref<1x4x256xf32, #tpu.memory_space<vmem>>, vector<1x4x256xf32>
    tpu.vector_store %arg6[%c0_18, %c0_19, %c0_20], %31 {strides = array<i32>} : memref<1x4x256xf32, #tpu.memory_space<vmem>>, vector<1x4x256xf32>,
    return
  }
  func.func @transform_0(%arg0: i32) -> (i32, i32, i32) {
    %c0_i32 = arith.constant 0 : i32
    %c0_i32_0 = arith.constant 0 : i32
    %c0_i32_1 = arith.constant 0 : i32
    return %arg0, %c0_i32, %c0_i32_0 : i32, i32, i32
  }
  func.func @transform_1(%arg0: i32) -> (i32, i32) {
    %c0_i32 = arith.constant 0 : i32
    %c0_i32_0 = arith.constant 0 : i32
    %c0_i32_1 = arith.constant 0 : i32
    return %c0_i32, %c0_i32_0 : i32, i32
  }
  func.func @transform_2(%arg0: i32) -> (i32, i32) {
    %c0_i32 = arith.constant 0 : i32
    %c0_i32_0 = arith.constant 0 : i32
    %c0_i32_1 = arith.constant 0 : i32
    return %c0_i32, %c0_i32_0 : i32, i32
  }
  func.func @transform_3(%arg0: i32) -> (i32, i32) {
    %c0_i32 = arith.constant 0 : i32
    %c0_i32_0 = arith.constant 0 : i32
    %c0_i32_1 = arith.constant 0 : i32
    return %c0_i32, %c0_i32_0 : i32, i32
  }
  func.func @transform_4(%arg0: i32) -> (i32, i32) {
    %c0_i32 = arith.constant 0 : i32
    %c0_i32_0 = arith.constant 0 : i32
    %c0_i32_1 = arith.constant 0 : i32
    return %c0_i32, %c0_i32_0 : i32, i32
  }
  func.func @transform_5(%arg0: i32) -> (i32, i32, i32) {
    %c0_i32 = arith.constant 0 : i32
    %c0_i32_0 = arith.constant 0 : i32
    %c0_i32_1 = arith.constant 0 : i32
    return %arg0, %c0_i32, %c0_i32_0 : i32, i32, i32
  }
}

</mosaic_0001>

<bundles_post_ra>
// kernel: tpu_custom_call.1
= control target key start
LH: loop header
LB: loop body
LE: loop exit
PB: predicated region body
PF: predicated region fallthrough
CT: control target
= control target key end

     0   :  { %s735_s0 = inlined_call_operand.hbm [shape: f32[2,4,256], index: 0, kind: input, shape index: {}]   ;;  %s736_s1 = inlined_call_operand.vmem [shape: f32[4,1], index: 1, kind: input, shape index: {}]   ;;  %s737_s2 = inlined_call_operand.<no memory space> [shape: f32[1,1], index: 2, kind: input, shape index: {}]   ;;  %s738_s3 = inlined_call_operand.vmem [shape: f32[1,4], index: 3, kind: input, shape index: {}]   ;;  %s739_s4 = inlined_call_operand.vmem [shape: f32[1,4], index: 4, kind: input, shape index: {}]   ;;  %s740_s5 = inlined_call_operand.hbm [shape: f32[2,4,256], index: 5, kind: output, shape index: {}]  }
   0x1   :  { %v10_v0 = vstv %s737_s2 }
   0x2   :  { %11 = vst [vmem:[#allocation2] sm:$0x1] %v10_v0 }
   0x3   :  { %12 = vsyncpa [#allocation4], 0 }
   0x4   :  { %14 = vsyncpa [#allocation4 + $0x1], 0 }
   0x5   :  { %15 = vsyncpa [#allocation5], 0 }
   0x6   :  { %17 = vsyncpa [#allocation5 + $0x1], 0  ;;  %s581_s20 = smov 0   ;;  %s583_s21 = smov 0  }
   0x7   :  { %s585_s22 = smov 0   ;;  %s587_s23 = smov 0  }
   0x8 LB: > { %s602_s2 = sadd.s32 4294967295, %s542_s23   ;;  %s384_s24 = sadd.s32 4294967294, %s542_s23   ;;  %s542_s23 = sphi %s587_s23, %s757_s23   ;;  %s538_s22 = sphi %s585_s22, %s756_s22   ;;  %s534_s21 = sphi %s583_s21, %s755_s21   ;;  %s530_s20 = sphi %s581_s20, %s754_s20  }
   0x9   : > { %s606_s25 = sadd.s32 1, %s542_s23   ;;  %s30_s26 = sadd.s32 1, %s538_s22 }
   0xa   : > { %s27_s27 = ssub.s32 %s542_s23, %s606_s25  ;;  %p37_p0 = scmp.ne.s32.totalorder %s538_s22, %s534_s21 }
   0xb   : > { %p28_p1 = scmp.eq.s32.totalorder %s27_s27, 0  ;;  %p38_p2 = scmp.eq.s32.totalorder %s542_s23, 0 }
   0xc   : > { %p43_p3 = scmp.ne.s32.totalorder %s534_s21, %s530_s20  ;;  %p44_p4 = scmp.eq.s32.totalorder %s602_s2, 0 }
   0xd   : > { %s618_s28 = scalar_select %p28_p1, %s538_s22, %s30_s26  }
   0xe   : > { %p620_p5 = por %p38_p2, %p37_p0  ;;  %p624_p6 = por %p44_p4, %p43_p3 }
   0xf   : > { %p151_p7 = scmp.eq.s32.totalorder %s602_s2, 1  ;;  %p157_p8 = scmp.eq.s32.totalorder %s384_s24, 1 }
  0x10   : > { %s744_s30 = scalar_select %p624_p6, 1, 0 }
  0x11   : > { %p412_p10 = scmp.lt.s32.totalorder %s542_s23, 2  ;;  %p631_p11 = por %p151_p7, %p37_p0 }
  0x12   : > { %p635_p12 = por %p157_p8, %p43_p3  ;;  %s189_s8 = sand.u32 1, %s538_s22  }
  0x13   : > { %s745_s6 = scalar_select %p631_p11, 1, 0 }
  0x14   : > { %s746_s7 = scalar_select %p635_p12, 1, 0 }
  0x15   : > { %s398_s9 = sshll.u32 %s542_s23, 7  ;;  %s387_s10 = sshll.u32 %s189_s8, 3 }
  0x16   : > { %s644_s13 = scalar_lea.hbm %s735_s0, %s398_s9  ;;  %s193_s14 = scalar_lea.vmem [#allocation3], %s387_s10 }
  0x17   : > { %s201_s15 = sshll.u32 %s193_s14, 4  ;;  %p648_p13 = pnand %p412_p10, %p620_p5  ;;  %s652_s15 = int_to_ptr.vmem [resolvable:$true] %s201_s15 }
  0x18   : > { %s190_s17 = scalar_lea.sflag [#allocation4], %s189_s8  ;;  %s450_s18 = scalar_lea.hbm %s644_s13, 128 }
  0x19   : > { %p451_p2 = scmp.ne.s32.totalorder %s644_s13, %s450_s18  ;;  %p452_p3 = pneg %p648_p13 }
  0x1a   : > { %s455_s26 = scalar_lea.hbm %s735_s0, 256  ;;  %p456_p5 = scmp.lt.s32.totalorder %s644_s13, %s735_s0 }
  0x1b   : > { %p453_p4 = pnand %p452_p3, %p451_p2  ;;  %p457_p8 = scmp.lt.s32.totalorder %s455_s26, %s450_s18 }
  0x1d   : > { %p454_p7 = pneg %p453_p4  ;;  %p458_p10 = por %p457_p8, %p456_p5 }
  0x1f   : > { %p459_p9 = pnand %p458_p10, %p454_p7 }
  0x21   : > { %462 = shalt.err (!%p459_p9)
}
  0x22   : > { %s463_s8 = scalar_lea.vmem %s652_s15, 128  ;;  %s544_s9 = smov [#allocation3]  }
  0x23   : > { %p464_p0 = scmp.ne.s32.totalorder %s652_s15, %s463_s8  ;;  %s468_s10 = sshll.u32 %s544_s9, 4  ;;  %s469_s10 = int_to_ptr.vmem [resolvable:$false] %s468_s10 }
  0x24   : > { %s470_s11 = scalar_lea.vmem %s469_s10, 256  ;;  %p471_p4 = scmp.lt.s32.totalorder %s652_s15, %s469_s10 }
  0x25   : > { %p466_p1 = pnand %p464_p0, %p452_p3  ;;  %p472_p12 = scmp.lt.s32.totalorder %s470_s11, %s463_s8 }
  0x27   : > { %p467_p2 = pneg %p466_p1  ;;  %p473_p11 = por %p472_p12, %p471_p4 }
  0x29   : > { %p474_p6 = pnand %p473_p11, %p467_p2 }
  0x2b   : > { %477 = shalt.err (!%p474_p6)
}
  0x2c   : > { %407 = dma.hbm_to_vmem [thread:$0]  (!%p648_p13), %s644_s13, 128, %s652_s15, %s190_s17  }
  0x2d   : > { %p748_p9 = scmp.lt.s32.totalorder %s542_s23, 3  ;;  %p749_p7 = scmp.ge.s32.totalorder %s542_s23, 1 }
  0x2f   : > { %p207_p0 = pnand %p749_p7, %p748_p9 }
  0x30   : > { %s679_s12 = sand.u32 (!%p207_p0), 1, %s534_s21   ;;  %p750_p6 = scmp.ne.s32.totalorder (!%p207_p0), %s744_s30, 0 }
  0x31   : > { %210 = sbr.rel (%p207_p0) target bundleno = 490 (0x1ea), region = 40  ;;  %s391_s14 = sshll.u32 (!%p207_p0), %s679_s12, 3 }
  0x32   : > { %s213_s18 = scalar_lea.sflag (!%p207_p0), [#allocation4], %s679_s12  ;;  %s216_s16 = scalar_lea.vmem (!%p207_p0), [#allocation3], %s391_s14 }
  0x36   : > { %521 = dma.done.wait (%p750_p6), %s213_s18, 128  }
  0x37   : > { %523 = vsyncadd (%p750_p6), %s213_s18, 4294967168  ;;  %vm247_vm0 = vcmask 1043456   ;;  %v243_v1 = vld [vmem:[%s216_s16] sm:$0xff]  ;;  %v545_v6 = vmov 0   ;;  %vm257_vm1 = vcmask 3072   ;;  %v281_v25 = vlaneseq  ;;  %s399_s26 = sshll.u32 %s602_s2, 7 }
  0x38   : > { %v245_v2 = vcombine.high %v243_v1, %v243_v1  ;;  %v248_v3 = vsel %vm247_vm0, %v243_v1, 0.0  ;;  %448 = vset.pattern.permute.xlu0 %v545_v6  ;;  %v254_v7 = vld [vmem:[%s736_s1] sm:$0xf]  ;;  %v546_v34 = vmov 839922192   ;;  %s242_s27 = scalar_lea.vmem [#allocation6], %s391_s14  ;;  %s312_s10 = scalar_lea.hbm %s740_s5, %s399_s26 }
  0x39   : > { %v265_v17 = vld [vmem:[#allocation2] sm:$0x1]  ;;  %v282_v28 = vshrl.u32 %v281_v25, 7  ;;  %v290_v35 = vunpack.c.l.s4 %v546_v34  ;;  %s314_s29 = sshll.u32 %s242_s27, 4  ;;  %s300_s11 = scalar_lea.sflag [#allocation5], %s679_s12  ;;  %s315_s29 = int_to_ptr.vmem [resolvable:$true] %s314_s29 }
  0x3a   : > { %v249_v4 = vsel %vm247_vm0, %v245_v2, 0.0  ;;  %v255_v21 = vld [vmem:[%s738_s3] sm:$0x1]  ;;  %s478_s18 = scalar_lea.vmem %s315_s29, 128  ;;  %p751_p12 = scmp.ne.s32.totalorder %s745_s6, 0 }
  0x3b   : > { %v250_v5 = vadd.f32 %v249_v4, %v248_v3  ;;  %v275_v22 = vld [vmem:[%s739_s4] sm:$0x1]  ;;  %v283_v31 = vsub.s32 0, %v282_v28  ;;  %v291_v36 = vunpack.c.0.s8 %v290_v35  ;;  %p479_p11 = scmp.ne.s32.totalorder %s315_s29, %s478_s18  ;;  %s547_s16 = smov [#allocation6]  }
  0x3c   : > { %s482_s13 = sshll.u32 %s547_s16, 4  ;;  %s483_s13 = int_to_ptr.vmem [resolvable:$false] %s482_s13 }
  0x3d   : > { %251 = vadd.xlane.f32.xlu0 %v250_v5  ;;  %v294_v37 = vsub.s32 %v291_v36, %v282_v28  ;;  %p480_p13 = pnand %p479_p11, %p751_p12  ;;  %s484_s2 = scalar_lea.vmem %s483_s13, 256 }
  0x3e   : > { %p485_p3 = scmp.lt.s32.totalorder %s315_s29, %s483_s13  ;;  %p486_p5 = scmp.lt.s32.totalorder %s484_s2, %s478_s18 }
  0x3f   : > { %p481_p1 = pneg %p480_p13 }
  0x40   : > { %p487_p8 = por %p486_p5, %p485_p3 }
  0x42   : > { %p488_p10 = pnand %p487_p8, %p481_p1 }
  0xc6   : > { %v252_v8 = vpop.xlane.xlu0 %251 }
  0xc7   : > { %v253_v9 = vmul.f32 0.00390625, %v252_v8 }
  0xc9   : > { %v256_v10 = vmul.f32 %v254_v7, %v253_v9 }
  0xcb   : > { %v258_v11 = vsel %vm257_vm1, %v256_v10, 0.0 }
  0xcc   : > { %v259_v12 = vrot.slane %v258_v11, 4 }
  0xce   : > { %v260_v13 = vadd.f32 %v259_v12, %v258_v11 }
  0xd0   : > { %v261_v14 = vrot.slane %v260_v13, 2 }
  0xd2   : > { %v262_v15 = vadd.f32 %v261_v14, %v260_v13 }
  0xd4   : > { %v263_v16 = vrot.slane %v262_v15, 1 }
  0xd6   : > { %v264_v18 = vadd.f32 %v263_v16, %v262_v15 }
  0xd8   : > { %v266_v19 = vadd.f32 %v265_v17, %v264_v18 }
  0xda   : > { %v267_v20 = vmax.f32 %v266_v19, 0.0 }
  0xdc   : > { %270 = vperm.xlu0 %448, %v267_v20  }
 0x157   : > { %v271_v23 = vpop.permute.xlu0 %270 }
 0x158   : > { %v273_v24 = vmul.f32 %v271_v23, %v255_v21 }
 0x15a   : > { %v276_v26 = vadd.f32 %v275_v22, %v273_v24 }
 0x15c   : > { %v277_v27 = vadd.f32 3.0, %v276_v26 }
 0x15e   : > { %v278_v29 = vmax.f32 %v277_v27, 0.0 }
 0x160   : > { %v279_v30 = vmin.f32 %v278_v29, 6.0 }
 0x162   : > { %v280_v32 = vmul.f32 0.16666667, %v279_v30 }
 0x164   : > { %v284_v33 = vrot.slane %v280_v32, %v283_v31 }
 0x166   : > { %286 = vbcast.lane.b32.xlu1 %v284_v33, 256 }
 0x1d8   : > { %v287_v38 = vpop.permute.xlu1 %286 }
 0x1d9   : > { %v295_v39 = vrot.slane %v287_v38, %v294_v37 }
 0x1db   : > { %v297_v40 = vmul.f32 %v295_v39, %v243_v1 }
 0x1dd   : > { %298 = vst [vmem:[%s242_s27] sm:$0xff] %v297_v40 }
 0x1de   : > { %491 = shalt.err (!%p488_p10)
}
 0x1df   : > { %s492_s14 = scalar_lea.hbm %s312_s10, 128  ;;  %s496_s30 = scalar_lea.hbm %s740_s5, 256 }
 0x1e0   : > { %p493_p2 = scmp.ne.s32.totalorder %s312_s10, %s492_s14  ;;  %p497_p7 = scmp.lt.s32.totalorder %s312_s10, %s740_s5 }
 0x1e1   : > { %p498_p0 = scmp.lt.s32.totalorder %s496_s30, %s492_s14 }
 0x1e2   : > { %p494_p4 = pnand %p493_p2, %p751_p12 }
 0x1e3   : > { %p499_p6 = por %p498_p0, %p497_p7 }
 0x1e4   : > { %p495_p9 = pneg %p494_p4 }
 0x1e6   : > { %p500_p11 = pnand %p499_p6, %p495_p9 }
 0x1e8   : > { %503 = shalt.err (!%p500_p11)
}
 0x1e9   : > { %402 = dma.vmem_to_hbm [thread:$0]  (%p751_p12), %s315_s29, 128, %s312_s10, %s300_s11  }
 0x1ea PF: > { %s326_s24 = sand.u32 1, %s530_s20   ;;  %p752_p13 = scmp.ne.s32.totalorder %s746_s7, 0 }
 0x1eb   : > { %p753_p1 = scmp.ge.s32.totalorder %s542_s23, 2  ;;  %s327_s26 = scalar_lea.sflag [#allocation5], %s326_s24 }
 0x1ed   : > { %p409_p3 = pnand %p753_p1, %p752_p13 }
 0x1ef   : > { %p410_p5 = pneg %p409_p3 }
 0x1f1   : > { %525 = dma.done.wait (%p410_p5), %s327_s26, 128  }
 0x1f2   : > { %527 = vsyncadd (%p410_p5), %s327_s26, 4294967168  ;;  %p20_p8 = scmp.ge.s32.totalorder %s606_s25, 4   ;;  %s754_s20 = smov %s534_s21 }
 0x1f3   : > { %s755_s21 = smov %s538_s22  ;;  %s756_s22 = smov %s618_s28 }
 0x1f4   : > { %s757_s23 = smov %s606_s25  ;;  %22 = sbr.rel (!%p20_p8) target bundleno = 8 (0x8), region = 85 }
 0x1f9   :  { %332 = vsyncpa [#allocation4], 1 }
 0x1fa   :  { %334 = vsyncpa [#allocation4 + $0x1], 1 }
 0x1fb   :  { %335 = vsyncpa [#allocation5], 1 }
 0x1fc   :  { %337 = vsyncpa [#allocation5 + $0x1], 1 }

</bundles_post_ra>
